<compile_context>
chip_gen: v6e
topology: v6e:2x2x1
jax: 0.10.0
libtpu: 0.0.40
codegen_flags: <defaults>
</compile_context>

<pallas_src>
import functools

import jax
import jax.numpy as jnp
from jax.experimental import pallas as pl
from jax.experimental.pallas import tpu as pltpu

NUM_HEADS = 4
SELU_ALPHA = 1.6732632423543772
SELU_SCALE = 1.0507009873554805


def _selu_unscaled(x):
    # SELU without the outer SCALE (folded into the next layer's weight).
    return jnp.where(x > 0, x, SELU_ALPHA * (jnp.exp(jnp.minimum(x, 0.0)) - 1.0))


def _f_full_kernel(x_ref, w0, b0, wqkv, bqkv, wo, bo,
                   w1, b1, w2, b2, w3, b3, out_ref, *, seq_len):
    R, I = x_ref.shape                      # R = block_b * S flattened rows
    S = seq_len
    Bblk = R // S
    H = w0.shape[1]
    HD = H // NUM_HEADS

    x = x_ref[...]                          # (R, I) bf16 (cast on the host side)

    # ---- Linear 0 + SELU (outer scale folded into wqkv) --------------------
    g0 = _selu_unscaled(
        jnp.dot(x, w0[...], preferred_element_type=jnp.float32) + b0[...])

    # ---- Fused QKV projection (q-scale & SELU scale folded into the weight) -
    qkv = jnp.dot(g0.astype(jnp.bfloat16), wqkv[...],
                  preferred_element_type=jnp.float32) + bqkv[...]       # (R, 3H)
    q = qkv[:, :H].reshape(Bblk, S, H).astype(jnp.bfloat16)
    k = qkv[:, H:2 * H].reshape(Bblk, S, H).astype(jnp.bfloat16)
    v = qkv[:, 2 * H:].reshape(Bblk, S, H).astype(jnp.bfloat16)

    # ---- Multi-head self-attention (dropout_p = 0) --------------------------
    ctx_heads = []
    for h in range(NUM_HEADS):
        lo, hi = h * HD, (h + 1) * HD
        qh, kh, vh = q[:, :, lo:hi], k[:, :, lo:hi], v[:, :, lo:hi]
        s = jnp.einsum('bsd,btd->bst', qh, kh,
                       preferred_element_type=jnp.float32)              # (Bblk,S,S)
        s = s - jnp.max(s, axis=-1, keepdims=True)
        p = jnp.exp(s)
        p = p * pl.reciprocal(jnp.sum(p, axis=-1, keepdims=True), approx=True)
        ctx_heads.append(
            jnp.einsum('bst,btd->bsd', p.astype(jnp.bfloat16), vh,
                       preferred_element_type=jnp.float32))             # (Bblk,S,HD)

    ctx = jnp.concatenate(ctx_heads, axis=-1).reshape(R, H)             # (R, H)

    # ---- Single output-projection matmul ------------------------------------
    attn = jnp.dot(ctx.astype(jnp.bfloat16), wo[...],
                   preferred_element_type=jnp.float32) + bo[...]

    # ---- Linear 1 + SELU, Linear 2 + SELU, final Linear 3 --------------------
    g1 = _selu_unscaled(jnp.dot(attn.astype(jnp.bfloat16), w1[...],
                                preferred_element_type=jnp.float32) + b1[...])
    g2 = _selu_unscaled(jnp.dot(g1.astype(jnp.bfloat16), w2[...],
                                preferred_element_type=jnp.float32) + b2[...])
    out = jnp.dot(g2.astype(jnp.bfloat16), w3[...],
                  preferred_element_type=jnp.float32) + b3[...]

    out_ref[...] = out.astype(out_ref.dtype)


_KPARAM_ORDER = ["w0", "b0", "wqkv", "bqkv", "wo", "bo",
                 "w1", "b1", "w2", "b2", "w3", "b3"]


def prepare_kernel_params(p):
    """One-time prep: fuse QKV, fold 1/sqrt(hd) + SELU scales, bf16 weights."""
    H = p["wq"].shape[0]
    HD = H // NUM_HEADS
    qscale = 1.0 / (HD ** 0.5)
    # SELU_SCALE from the preceding SELU is folded into the consuming weight.
    wqkv = jnp.concatenate([p["wq"] * qscale, p["wk"], p["wv"]], axis=1) * SELU_SCALE
    bqkv = jnp.concatenate([p["bq"] * qscale, p["bk"], p["bv"]], axis=1)
    bf = lambda a: a.astype(jnp.bfloat16)
    return {
        "w0": bf(p["w0"]), "b0": p["b0"],
        "wqkv": bf(wqkv), "bqkv": bqkv,
        "wo": bf(p["wo"]), "bo": p["bo"],
        "w1": bf(p["w1"]), "b1": p["b1"],
        "w2": bf(p["w2"] * SELU_SCALE), "b2": p["b2"],
        "w3": bf(p["w3"] * SELU_SCALE), "b3": p["b3"],
    }


def _pick_block_b(B, S, target_rows=256, max_rows=2048):
    """Largest divisor of B whose row count approaches target_rows (MXU M dim),
    preferring a grid length >= 2 (v7x has two TensorCores) when that still
    keeps the block reasonably full."""
    divs = [d for d in range(1, B + 1) if B % d == 0]
    block_b = divs[0]
    for d in divs:
        if d * S > max_rows:
            break
        block_b = d
        if d * S >= target_rows:
            break
    if B // block_b == 1 and B > 1:
        smaller = [d for d in divs if d < block_b and d * S >= 128]
        if smaller:
            block_b = smaller[-1]
    return block_b


def f_full_forward(y, kparams, block_b=None):
    """y: (B, S, input_size) float32, kparams from prepare_kernel_params."""
    B, S, I = y.shape
    O = kparams["w3"].shape[1]
    if block_b is None:
        block_b = _pick_block_b(B, S)
    assert B % block_b == 0
    rows = block_b * S

    weights = [kparams[n] for n in _KPARAM_ORDER]

    # Flatten + bf16 on the wrapper side: half the input DMA bytes, 2-D blocks.
    x2 = y.reshape(B * S, I).astype(jnp.bfloat16)

    def w_spec(a):
        return pl.BlockSpec(a.shape, lambda b: (0, 0))   # resident weights (all 2-D)

    in_specs = ([pl.BlockSpec((rows, I), lambda b: (b, 0))]
                + [w_spec(a) for a in weights])
    out_spec = pl.BlockSpec((rows, O), lambda b: (b, 0))

    out2 = pl.pallas_call(
        functools.partial(_f_full_kernel, seq_len=S),
        out_shape=jax.ShapeDtypeStruct((B * S, O), jnp.float32),
        grid=(B // block_b,),
        in_specs=in_specs,
        out_specs=out_spec,
        compiler_params=pltpu.CompilerParams(
            dimension_semantics=("parallel",),
            vmem_limit_bytes=32 * 1024 * 1024,   # well inside v7x's 64 MiB VMEM
        ),
    )(x2, *weights)
    return out2.reshape(B, S, O)


def init_params(key, input_size, hidden_size, output_size):
    ks = jax.random.split(key, 16)
    sc = 0.1

    def nrm(k, shape):
        return (sc * jax.random.normal(k, shape)).astype(jnp.float32)

    return {
        "w0": nrm(ks[0], (input_size, hidden_size)),  "b0": nrm(ks[1], (1, hidden_size)),
        "wq": nrm(ks[2], (hidden_size, hidden_size)), "bq": nrm(ks[3], (1, hidden_size)),
        "wk": nrm(ks[4], (hidden_size, hidden_size)), "bk": nrm(ks[5], (1, hidden_size)),
        "wv": nrm(ks[6], (hidden_size, hidden_size)), "bv": nrm(ks[7], (1, hidden_size)),
        "wo": nrm(ks[8], (hidden_size, hidden_size)), "bo": nrm(ks[9], (1, hidden_size)),
        "w1": nrm(ks[10], (hidden_size, hidden_size)), "b1": nrm(ks[11], (1, hidden_size)),
        "w2": nrm(ks[12], (hidden_size, hidden_size)), "b2": nrm(ks[13], (1, hidden_size)),
        "w3": nrm(ks[14], (hidden_size, output_size)), "b3": nrm(ks[15], (1, output_size)),
    }


def _selu(x):
    return SELU_SCALE * jnp.where(x > 0, x, SELU_ALPHA * (jnp.exp(jnp.minimum(x, 0.0)) - 1.0))


def ref_forward(y, p):
    """Plain-JAX f32 reference mirroring the PyTorch forward (3D input path)."""
    B, S, _ = y.shape
    h = _selu(y @ p["w0"] + p["b0"])
    q = h @ p["wq"] + p["bq"]
    k = h @ p["wk"] + p["bk"]
    v = h @ p["wv"] + p["bv"]
    H = q.shape[-1]
    hd = H // NUM_HEADS
    qh = q.reshape(B, S, NUM_HEADS, hd).transpose(0, 2, 1, 3)
    kh = k.reshape(B, S, NUM_HEADS, hd).transpose(0, 2, 1, 3)
    vh = v.reshape(B, S, NUM_HEADS, hd).transpose(0, 2, 1, 3)
    s = (qh @ kh.transpose(0, 1, 3, 2)) / (hd ** 0.5)
    pattn = jax.nn.softmax(s, axis=-1)
    o = (pattn @ vh).transpose(0, 2, 1, 3).reshape(B, S, H)
    attn = o @ p["wo"] + p["bo"]
    h1 = _selu(attn @ p["w1"] + p["b1"])
    h2 = _selu(h1 @ p["w2"] + p["b2"])
    return h2 @ p["w3"] + p["b3"]


if __name__ == "__main__":
    B, S = 2, 8
    input_size, hidden_size, output_size = 16, 32, 8

    key = jax.random.PRNGKey(0)
    kx, kp = jax.random.split(key)
    y = jax.random.normal(kx, (B, S, input_size), dtype=jnp.float32)
    params = init_params(kp, input_size, hidden_size, output_size)
    kparams = prepare_kernel_params(params)

    out = f_full_forward(y, kparams)
    out = jax.block_until_ready(out)

    ref = ref_forward(y, params)
    assert out.shape == (B, S, output_size)
    # bf16 MXU inputs + approx reciprocal -> loosened tolerance vs f32 reference
    assert jnp.allclose(out, ref, atol=2e-2, rtol=2e-2), "mismatch vs reference"

    print("KERNEL_OK")
</pallas_src>

<mosaic_0001>
module attributes {stable_mosaic.version = 11 : i64} {
  func.func @_f_full_kernel(%arg0: i32, %arg1: memref<16x16xbf16, #tpu.memory_space<vmem>>, %arg2: memref<16x32xbf16, #tpu.memory_space<vmem>>, %arg3: memref<1x32xf32, #tpu.memory_space<vmem>>, %arg4: memref<32x96xbf16, #tpu.memory_space<vmem>>, %arg5: memref<1x96xf32, #tpu.memory_space<vmem>>, %arg6: memref<32x32xbf16, #tpu.memory_space<vmem>>, %arg7: memref<1x32xf32, #tpu.memory_space<vmem>>, %arg8: memref<32x32xbf16, #tpu.memory_space<vmem>>, %arg9: memref<1x32xf32, #tpu.memory_space<vmem>>, %arg10: memref<32x32xbf16, #tpu.memory_space<vmem>>, %arg11: memref<1x32xf32, #tpu.memory_space<vmem>>, %arg12: memref<32x8xbf16, #tpu.memory_space<vmem>>, %arg13: memref<1x8xf32, #tpu.memory_space<vmem>>, %arg14: memref<16x8xf32, #tpu.memory_space<vmem>>) attributes {dimension_semantics = [#tpu.dimension_semantics<parallel>], iteration_bounds = array<i64: 1>, scalar_prefetch = 0 : i64, scratch_operands = 0 : i64, tpu.core_type = #tpu.core_type<tc>, window_params = [{transform_indices = @transform_0, window_bounds = array<i64: 16, 16>}, {pipeline_mode = #tpu.pipeline_mode<synchronous>, transform_indices = @transform_1, window_bounds = array<i64: 16, 32>}, {pipeline_mode = #tpu.pipeline_mode<synchronous>, transform_indices = @transform_2, window_bounds = array<i64: 1, 32>}, {pipeline_mode = #tpu.pipeline_mode<synchronous>, transform_indices = @transform_3, window_bounds = array<i64: 32, 96>}, {pipeline_mode = #tpu.pipeline_mode<synchronous>, transform_indices = @transform_4, window_bounds = array<i64: 1, 96>}, {pipeline_mode = #tpu.pipeline_mode<synchronous>, transform_indices = @transform_5, window_bounds = array<i64: 32, 32>}, {pipeline_mode = #tpu.pipeline_mode<synchronous>, transform_indices = @transform_6, window_bounds = array<i64: 1, 32>}, {pipeline_mode = #tpu.pipeline_mode<synchronous>, transform_indices = @transform_7, window_bounds = array<i64: 32, 32>}, {pipeline_mode = #tpu.pipeline_mode<synchronous>, transform_indices = @transform_8, window_bounds = array<i64: 1, 32>}, {pipeline_mode = #tpu.pipeline_mode<synchronous>, transform_indices = @transform_9, window_bounds = array<i64: 32, 32>}, {pipeline_mode = #tpu.pipeline_mode<synchronous>, transform_indices = @transform_10, window_bounds = array<i64: 1, 32>}, {pipeline_mode = #tpu.pipeline_mode<synchronous>, transform_indices = @transform_11, window_bounds = array<i64: 32, 8>}, {pipeline_mode = #tpu.pipeline_mode<synchronous>, transform_indices = @transform_12, window_bounds = array<i64: 1, 8>}, {transform_indices = @transform_13, window_bounds = array<i64: 16, 8>}]} {
    %c0 = arith.constant 0 : index
    %c0_0 = arith.constant 0 : index
    %0 = vector.load %arg1[%c0, %c0_0] : memref<16x16xbf16, #tpu.memory_space<vmem>>, vector<16x16xbf16>
    %c0_1 = arith.constant 0 : index
    %c0_2 = arith.constant 0 : index
    %1 = vector.load %arg2[%c0_1, %c0_2] : memref<16x32xbf16, #tpu.memory_space<vmem>>, vector<16x32xbf16>
    %cst = arith.constant dense<0.000000e+00> : vector<16x32xf32>
    %2 = tpu.matmul %0, %1, %cst {dimension_numbers = #tpu.dot_dimension_numbers<[1], [0], [0], [1], [0, 0, 1, 1], [], []>} : vector<16x16xbf16>, vector<16x32xbf16>, vector<16x32xf32> -> vector<16x32xf32>
    %c0_3 = arith.constant 0 : index
    %c0_4 = arith.constant 0 : index
    %3 = vector.load %arg3[%c0_3, %c0_4] : memref<1x32xf32, #tpu.memory_space<vmem>>, vector<1x32xf32>
    %4 = vector.broadcast %3 : vector<1x32xf32> to vector<16x32xf32>
    %5 = arith.addf %2, %4 : vector<16x32xf32>
    %cst_5 = arith.constant 0.000000e+00 : f32
    %6 = vector.broadcast %cst_5 : f32 to vector<16x32xf32>
    %7 = arith.cmpf ogt, %5, %6 : vector<16x32xf32>
    %cst_6 = arith.constant 0.000000e+00 : f32
    %8 = vector.broadcast %cst_6 : f32 to vector<16x32xf32>
    %9 = arith.minimumf %5, %8 : vector<16x32xf32>
    %10 = math.exp %9 : vector<16x32xf32>
    %cst_7 = arith.constant 1.000000e+00 : f32
    %11 = vector.broadcast %cst_7 : f32 to vector<16x32xf32>
    %12 = arith.subf %10, %11 : vector<16x32xf32>
    %cst_8 = arith.constant 1.67326319 : f32
    %13 = vector.broadcast %cst_8 : f32 to vector<16x32xf32>
    %14 = arith.mulf %13, %12 : vector<16x32xf32>
    %15 = arith.select %7, %5, %14 : vector<16x32xi1>, vector<16x32xf32>
    %16 = arith.truncf %15 : vector<16x32xf32> to vector<16x32xbf16>
    %c0_9 = arith.constant 0 : index
    %c0_10 = arith.constant 0 : index
    %17 = vector.load %arg4[%c0_9, %c0_10] : memref<32x96xbf16, #tpu.memory_space<vmem>>, vector<32x96xbf16>
    %cst_11 = arith.constant dense<0.000000e+00> : vector<16x96xf32>
    %18 = tpu.matmul %16, %17, %cst_11 {dimension_numbers = #tpu.dot_dimension_numbers<[1], [0], [0], [1], [0, 0, 1, 1], [], []>} : vector<16x32xbf16>, vector<32x96xbf16>, vector<16x96xf32> -> vector<16x96xf32>
    %c0_12 = arith.constant 0 : index
    %c0_13 = arith.constant 0 : index
    %19 = vector.load %arg5[%c0_12, %c0_13] : memref<1x96xf32, #tpu.memory_space<vmem>>, vector<1x96xf32>
    %20 = vector.broadcast %19 : vector<1x96xf32> to vector<16x96xf32>
    %21 = arith.addf %18, %20 : vector<16x96xf32>
    %22 = vector.extract_strided_slice %21 {offsets = [0, 0], sizes = [16, 32], strides = [1, 1]} : vector<16x96xf32> to vector<16x32xf32>
    %23 = vector.shape_cast %22 : vector<16x32xf32> to vector<2x8x32xf32>
    %24 = arith.truncf %23 : vector<2x8x32xf32> to vector<2x8x32xbf16>
    %25 = vector.extract_strided_slice %21 {offsets = [0, 32], sizes = [16, 32], strides = [1, 1]} : vector<16x96xf32> to vector<16x32xf32>
    %26 = vector.shape_cast %25 : vector<16x32xf32> to vector<2x8x32xf32>
    %27 = arith.truncf %26 : vector<2x8x32xf32> to vector<2x8x32xbf16>
    %28 = vector.extract_strided_slice %21 {offsets = [0, 64], sizes = [16, 32], strides = [1, 1]} : vector<16x96xf32> to vector<16x32xf32>
    %29 = vector.shape_cast %28 : vector<16x32xf32> to vector<2x8x32xf32>
    %30 = arith.truncf %29 : vector<2x8x32xf32> to vector<2x8x32xbf16>
    %31 = vector.extract_strided_slice %24 {offsets = [0, 0, 0], sizes = [2, 8, 8], strides = [1, 1, 1]} : vector<2x8x32xbf16> to vector<2x8x8xbf16>
    %32 = vector.extract_strided_slice %27 {offsets = [0, 0, 0], sizes = [2, 8, 8], strides = [1, 1, 1]} : vector<2x8x32xbf16> to vector<2x8x8xbf16>
    %33 = vector.extract_strided_slice %30 {offsets = [0, 0, 0], sizes = [2, 8, 8], strides = [1, 1, 1]} : vector<2x8x32xbf16> to vector<2x8x8xbf16>
    "tpu.trace_start"() <{level = 10 : i32, message = "bsd,btd->bst"}> : () -> ()
    %cst_14 = arith.constant dense<0.000000e+00> : vector<2x8x8xf32>
    %34 = tpu.matmul %31, %32, %cst_14 {dimension_numbers = #tpu.dot_dimension_numbers<[2], [2], [1], [1], [0, 0, 0, 1, 1, 1], [0], [0]>} : vector<2x8x8xbf16>, vector<2x8x8xbf16>, vector<2x8x8xf32> -> vector<2x8x8xf32>
    "tpu.trace_stop"() : () -> ()
    %cst_15 = arith.constant dense<0xFF800000> : vector<2x8xf32>
    %35 = vector.multi_reduction <maximumf>, %34, %cst_15 [2] : vector<2x8x8xf32> to vector<2x8xf32>
    %36 = vector.shape_cast %35 : vector<2x8xf32> to vector<2x8x1xf32>
    %37 = vector.broadcast %36 : vector<2x8x1xf32> to vector<2x8x8xf32>
    %38 = arith.subf %34, %37 : vector<2x8x8xf32>
    %39 = math.exp %38 : vector<2x8x8xf32>
    %cst_16 = arith.constant dense<0.000000e+00> : vector<2x8xf32>
    %40 = vector.multi_reduction <add>, %39, %cst_16 [2] : vector<2x8x8xf32> to vector<2x8xf32>
    %41 = vector.shape_cast %40 : vector<2x8xf32> to vector<2x8x1xf32>
    %42 = tpu.reciprocal %41 {approx = true} : vector<2x8x1xf32> -> vector<2x8x1xf32>
    %43 = vector.broadcast %42 : vector<2x8x1xf32> to vector<2x8x8xf32>
    %44 = arith.mulf %39, %43 : vector<2x8x8xf32>
    %45 = arith.truncf %44 : vector<2x8x8xf32> to vector<2x8x8xbf16>
    "tpu.trace_start"() <{level = 10 : i32, message = "bst,btd->bsd"}> : () -> ()
    %cst_17 = arith.constant dense<0.000000e+00> : vector<2x8x8xf32>
    %46 = tpu.matmul %45, %33, %cst_17 {dimension_numbers = #tpu.dot_dimension_numbers<[2], [1], [1], [2], [0, 0, 0, 1, 1, 2], [0], [0]>} : vector<2x8x8xbf16>, vector<2x8x8xbf16>, vector<2x8x8xf32> -> vector<2x8x8xf32>
    "tpu.trace_stop"() : () -> ()
    %47 = vector.extract_strided_slice %24 {offsets = [0, 0, 8], sizes = [2, 8, 8], strides = [1, 1, 1]} : vector<2x8x32xbf16> to vector<2x8x8xbf16>
    %48 = vector.extract_strided_slice %27 {offsets = [0, 0, 8], sizes = [2, 8, 8], strides = [1, 1, 1]} : vector<2x8x32xbf16> to vector<2x8x8xbf16>
    %49 = vector.extract_strided_slice %30 {offsets = [0, 0, 8], sizes = [2, 8, 8], strides = [1, 1, 1]} : vector<2x8x32xbf16> to vector<2x8x8xbf16>
    "tpu.trace_start"() <{level = 10 : i32, message = "bsd,btd->bst"}> : () -> ()
    %cst_18 = arith.constant dense<0.000000e+00> : vector<2x8x8xf32>
    %50 = tpu.matmul %47, %48, %cst_18 {dimension_numbers = #tpu.dot_dimension_numbers<[2], [2], [1], [1], [0, 0, 0, 1, 1, 1], [0], [0]>} : vector<2x8x8xbf16>, vector<2x8x8xbf16>, vector<2x8x8xf32> -> vector<2x8x8xf32>
    "tpu.trace_stop"() : () -> ()
    %cst_19 = arith.constant dense<0xFF800000> : vector<2x8xf32>
    %51 = vector.multi_reduction <maximumf>, %50, %cst_19 [2] : vector<2x8x8xf32> to vector<2x8xf32>
    %52 = vector.shape_cast %51 : vector<2x8xf32> to vector<2x8x1xf32>
    %53 = vector.broadcast %52 : vector<2x8x1xf32> to vector<2x8x8xf32>
    %54 = arith.subf %50, %53 : vector<2x8x8xf32>
    %55 = math.exp %54 : vector<2x8x8xf32>
    %cst_20 = arith.constant dense<0.000000e+00> : vector<2x8xf32>
    %56 = vector.multi_reduction <add>, %55, %cst_20 [2] : vector<2x8x8xf32> to vector<2x8xf32>
    %57 = vector.shape_cast %56 : vector<2x8xf32> to vector<2x8x1xf32>
    %58 = tpu.reciprocal %57 {approx = true} : vector<2x8x1xf32> -> vector<2x8x1xf32>
    %59 = vector.broadcast %58 : vector<2x8x1xf32> to vector<2x8x8xf32>
    %60 = arith.mulf %55, %59 : vector<2x8x8xf32>
    %61 = arith.truncf %60 : vector<2x8x8xf32> to vector<2x8x8xbf16>
    "tpu.trace_start"() <{level = 10 : i32, message = "bst,btd->bsd"}> : () -> ()
    %cst_21 = arith.constant dense<0.000000e+00> : vector<2x8x8xf32>
    %62 = tpu.matmul %61, %49, %cst_21 {dimension_numbers = #tpu.dot_dimension_numbers<[2], [1], [1], [2], [0, 0, 0, 1, 1, 2], [0], [0]>} : vector<2x8x8xbf16>, vector<2x8x8xbf16>, vector<2x8x8xf32> -> vector<2x8x8xf32>
    "tpu.trace_stop"() : () -> ()
    %63 = vector.extract_strided_slice %24 {offsets = [0, 0, 16], sizes = [2, 8, 8], strides = [1, 1, 1]} : vector<2x8x32xbf16> to vector<2x8x8xbf16>
    %64 = vector.extract_strided_slice %27 {offsets = [0, 0, 16], sizes = [2, 8, 8], strides = [1, 1, 1]} : vector<2x8x32xbf16> to vector<2x8x8xbf16>
    %65 = vector.extract_strided_slice %30 {offsets = [0, 0, 16], sizes = [2, 8, 8], strides = [1, 1, 1]} : vector<2x8x32xbf16> to vector<2x8x8xbf16>
    "tpu.trace_start"() <{level = 10 : i32, message = "bsd,btd->bst"}> : () -> ()
    %cst_22 = arith.constant dense<0.000000e+00> : vector<2x8x8xf32>
    %66 = tpu.matmul %63, %64, %cst_22 {dimension_numbers = #tpu.dot_dimension_numbers<[2], [2], [1], [1], [0, 0, 0, 1, 1, 1], [0], [0]>} : vector<2x8x8xbf16>, vector<2x8x8xbf16>, vector<2x8x8xf32> -> vector<2x8x8xf32>
    "tpu.trace_stop"() : () -> ()
    %cst_23 = arith.constant dense<0xFF800000> : vector<2x8xf32>
    %67 = vector.multi_reduction <maximumf>, %66, %cst_23 [2] : vector<2x8x8xf32> to vector<2x8xf32>
    %68 = vector.shape_cast %67 : vector<2x8xf32> to vector<2x8x1xf32>
    %69 = vector.broadcast %68 : vector<2x8x1xf32> to vector<2x8x8xf32>
    %70 = arith.subf %66, %69 : vector<2x8x8xf32>
    %71 = math.exp %70 : vector<2x8x8xf32>
    %cst_24 = arith.constant dense<0.000000e+00> : vector<2x8xf32>
    %72 = vector.multi_reduction <add>, %71, %cst_24 [2] : vector<2x8x8xf32> to vector<2x8xf32>
    %73 = vector.shape_cast %72 : vector<2x8xf32> to vector<2x8x1xf32>
    %74 = tpu.reciprocal %73 {approx = true} : vector<2x8x1xf32> -> vector<2x8x1xf32>
    %75 = vector.broadcast %74 : vector<2x8x1xf32> to vector<2x8x8xf32>
    %76 = arith.mulf %71, %75 : vector<2x8x8xf32>
    %77 = arith.truncf %76 : vector<2x8x8xf32> to vector<2x8x8xbf16>
    "tpu.trace_start"() <{level = 10 : i32, message = "bst,btd->bsd"}> : () -> ()
    %cst_25 = arith.constant dense<0.000000e+00> : vector<2x8x8xf32>
    %78 = tpu.matmul %77, %65, %cst_25 {dimension_numbers = #tpu.dot_dimension_numbers<[2], [1], [1], [2], [0, 0, 0, 1, 1, 2], [0], [0]>} : vector<2x8x8xbf16>, vector<2x8x8xbf16>, vector<2x8x8xf32> -> vector<2x8x8xf32>
    "tpu.trace_stop"() : () -> ()
    %79 = vector.extract_strided_slice %24 {offsets = [0, 0, 24], sizes = [2, 8, 8], strides = [1, 1, 1]} : vector<2x8x32xbf16> to vector<2x8x8xbf16>
    %80 = vector.extract_strided_slice %27 {offsets = [0, 0, 24], sizes = [2, 8, 8], strides = [1, 1, 1]} : vector<2x8x32xbf16> to vector<2x8x8xbf16>
    %81 = vector.extract_strided_slice %30 {offsets = [0, 0, 24], sizes = [2, 8, 8], strides = [1, 1, 1]} : vector<2x8x32xbf16> to vector<2x8x8xbf16>
    "tpu.trace_start"() <{level = 10 : i32, message = "bsd,btd->bst"}> : () -> ()
    %cst_26 = arith.constant dense<0.000000e+00> : vector<2x8x8xf32>
    %82 = tpu.matmul %79, %80, %cst_26 {dimension_numbers = #tpu.dot_dimension_numbers<[2], [2], [1], [1], [0, 0, 0, 1, 1, 1], [0], [0]>} : vector<2x8x8xbf16>, vector<2x8x8xbf16>, vector<2x8x8xf32> -> vector<2x8x8xf32>
    "tpu.trace_stop"() : () -> ()
    %cst_27 = arith.constant dense<0xFF800000> : vector<2x8xf32>
    %83 = vector.multi_reduction <maximumf>, %82, %cst_27 [2] : vector<2x8x8xf32> to vector<2x8xf32>
    %84 = vector.shape_cast %83 : vector<2x8xf32> to vector<2x8x1xf32>
    %85 = vector.broadcast %84 : vector<2x8x1xf32> to vector<2x8x8xf32>
    %86 = arith.subf %82, %85 : vector<2x8x8xf32>
    %87 = math.exp %86 : vector<2x8x8xf32>
    %cst_28 = arith.constant dense<0.000000e+00> : vector<2x8xf32>
    %88 = vector.multi_reduction <add>, %87, %cst_28 [2] : vector<2x8x8xf32> to vector<2x8xf32>
    %89 = vector.shape_cast %88 : vector<2x8xf32> to vector<2x8x1xf32>
    %90 = tpu.reciprocal %89 {approx = true} : vector<2x8x1xf32> -> vector<2x8x1xf32>
    %91 = vector.broadcast %90 : vector<2x8x1xf32> to vector<2x8x8xf32>
    %92 = arith.mulf %87, %91 : vector<2x8x8xf32>
    %93 = arith.truncf %92 : vector<2x8x8xf32> to vector<2x8x8xbf16>
    "tpu.trace_start"() <{level = 10 : i32, message = "bst,btd->bsd"}> : () -> ()
    %cst_29 = arith.constant dense<0.000000e+00> : vector<2x8x8xf32>
    %94 = tpu.matmul %93, %81, %cst_29 {dimension_numbers = #tpu.dot_dimension_numbers<[2], [1], [1], [2], [0, 0, 0, 1, 1, 2], [0], [0]>} : vector<2x8x8xbf16>, vector<2x8x8xbf16>, vector<2x8x8xf32> -> vector<2x8x8xf32>
    "tpu.trace_stop"() : () -> ()
    %95 = tpu.concatenate %46, %62, %78, %94 in 2 : vector<2x8x8xf32>, vector<2x8x8xf32>, vector<2x8x8xf32>, vector<2x8x8xf32> -> vector<2x8x32xf32>
    %96 = vector.shape_cast %95 : vector<2x8x32xf32> to vector<16x32xf32>
    %97 = arith.truncf %96 : vector<16x32xf32> to vector<16x32xbf16>
    %c0_30 = arith.constant 0 : index
    %c0_31 = arith.constant 0 : index
    %98 = vector.load %arg6[%c0_30, %c0_31] : memref<32x32xbf16, #tpu.memory_space<vmem>>, vector<32x32xbf16>
    %cst_32 = arith.constant dense<0.000000e+00> : vector<16x32xf32>
    %99 = tpu.matmul %97, %98, %cst_32 {dimension_numbers = #tpu.dot_dimension_numbers<[1], [0], [0], [1], [0, 0, 1, 1], [], []>} : vector<16x32xbf16>, vector<32x32xbf16>, vector<16x32xf32> -> vector<16x32xf32>
    %c0_33 = arith.constant 0 : index
    %c0_34 = arith.constant 0 : index
    %100 = vector.load %arg7[%c0_33, %c0_34] : memref<1x32xf32, #tpu.memory_space<vmem>>, vector<1x32xf32>
    %101 = vector.broadcast %100 : vector<1x32xf32> to vector<16x32xf32>
    %102 = arith.addf %99, %101 : vector<16x32xf32>
    %103 = arith.truncf %102 : vector<16x32xf32> to vector<16x32xbf16>
    %c0_35 = arith.constant 0 : index
    %c0_36 = arith.constant 0 : index
    %104 = vector.load %arg8[%c0_35, %c0_36] : memref<32x32xbf16, #tpu.memory_space<vmem>>, vector<32x32xbf16>
    %cst_37 = arith.constant dense<0.000000e+00> : vector<16x32xf32>
    %105 = tpu.matmul %103, %104, %cst_37 {dimension_numbers = #tpu.dot_dimension_numbers<[1], [0], [0], [1], [0, 0, 1, 1], [], []>} : vector<16x32xbf16>, vector<32x32xbf16>, vector<16x32xf32> -> vector<16x32xf32>
    %c0_38 = arith.constant 0 : index
    %c0_39 = arith.constant 0 : index
    %106 = vector.load %arg9[%c0_38, %c0_39] : memref<1x32xf32, #tpu.memory_space<vmem>>, vector<1x32xf32>
    %107 = vector.broadcast %106 : vector<1x32xf32> to vector<16x32xf32>
    %108 = arith.addf %105, %107 : vector<16x32xf32>
    %cst_40 = arith.constant 0.000000e+00 : f32
    %109 = vector.broadcast %cst_40 : f32 to vector<16x32xf32>
    %110 = arith.cmpf ogt, %108, %109 : vector<16x32xf32>
    %cst_41 = arith.constant 0.000000e+00 : f32
    %111 = vector.broadcast %cst_41 : f32 to vector<16x32xf32>
    %112 = arith.minimumf %108, %111 : vector<16x32xf32>
    %113 = math.exp %112 : vector<16x32xf32>
    %cst_42 = arith.constant 1.000000e+00 : f32
    %114 = vector.broadcast %cst_42 : f32 to vector<16x32xf32>
    %115 = arith.subf %113, %114 : vector<16x32xf32>
    %cst_43 = arith.constant 1.67326319 : f32
    %116 = vector.broadcast %cst_43 : f32 to vector<16x32xf32>
    %117 = arith.mulf %116, %115 : vector<16x32xf32>
    %118 = arith.select %110, %108, %117 : vector<16x32xi1>, vector<16x32xf32>
    %119 = arith.truncf %118 : vector<16x32xf32> to vector<16x32xbf16>
    %c0_44 = arith.constant 0 : index
    %c0_45 = arith.constant 0 : index
    %120 = vector.load %arg10[%c0_44, %c0_45] : memref<32x32xbf16, #tpu.memory_space<vmem>>, vector<32x32xbf16>
    %cst_46 = arith.constant dense<0.000000e+00> : vector<16x32xf32>
    %121 = tpu.matmul %119, %120, %cst_46 {dimension_numbers = #tpu.dot_dimension_numbers<[1], [0], [0], [1], [0, 0, 1, 1], [], []>} : vector<16x32xbf16>, vector<32x32xbf16>, vector<16x32xf32> -> vector<16x32xf32>
    %c0_47 = arith.constant 0 : index
    %c0_48 = arith.constant 0 : index
    %122 = vector.load %arg11[%c0_47, %c0_48] : memref<1x32xf32, #tpu.memory_space<vmem>>, vector<1x32xf32>
    %123 = vector.broadcast %122 : vector<1x32xf32> to vector<16x32xf32>
    %124 = arith.addf %121, %123 : vector<16x32xf32>
    %cst_49 = arith.constant 0.000000e+00 : f32
    %125 = vector.broadcast %cst_49 : f32 to vector<16x32xf32>
    %126 = arith.cmpf ogt, %124, %125 : vector<16x32xf32>
    %cst_50 = arith.constant 0.000000e+00 : f32
    %127 = vector.broadcast %cst_50 : f32 to vector<16x32xf32>
    %128 = arith.minimumf %124, %127 : vector<16x32xf32>
    %129 = math.exp %128 : vector<16x32xf32>
    %cst_51 = arith.constant 1.000000e+00 : f32
    %130 = vector.broadcast %cst_51 : f32 to vector<16x32xf32>
    %131 = arith.subf %129, %130 : vector<16x32xf32>
    %cst_52 = arith.constant 1.67326319 : f32
    %132 = vector.broadcast %cst_52 : f32 to vector<16x32xf32>
    %133 = arith.mulf %132, %131 : vector<16x32xf32>
    %134 = arith.select %126, %124, %133 : vector<16x32xi1>, vector<16x32xf32>
    %135 = arith.truncf %134 : vector<16x32xf32> to vector<16x32xbf16>
    %c0_53 = arith.constant 0 : index
    %c0_54 = arith.constant 0 : index
    %136 = vector.load %arg12[%c0_53, %c0_54] : memref<32x8xbf16, #tpu.memory_space<vmem>>, vector<32x8xbf16>
    %cst_55 = arith.constant dense<0.000000e+00> : vector<16x8xf32>
    %137 = tpu.matmul %135, %136, %cst_55 {dimension_numbers = #tpu.dot_dimension_numbers<[1], [0], [0], [1], [0, 0, 1, 1], [], []>} : vector<16x32xbf16>, vector<32x8xbf16>, vector<16x8xf32> -> vector<16x8xf32>
    %c0_56 = arith.constant 0 : index
    %c0_57 = arith.constant 0 : index
    %138 = vector.load %arg13[%c0_56, %c0_57] : memref<1x8xf32, #tpu.memory_space<vmem>>, vector<1x8xf32>
    %139 = vector.broadcast %138 : vector<1x8xf32> to vector<16x8xf32>
    %140 = arith.addf %137, %139 : vector<16x8xf32>
    %c0_58 = arith.constant 0 : index
    %c0_59 = arith.constant 0 : index
    %141 = vector.load %arg14[%c0_58, %c0_59] : memref<16x8xf32, #tpu.memory_space<vmem>>, vector<16x8xf32>
    tpu.vector_store %arg14[%c0_58, %c0_59], %140 {strides = array<i32>} : memref<16x8xf32, #tpu.memory_space<vmem>>, vector<16x8xf32>,
    return
  }
  func.func @transform_0(%arg0: i32) -> (i32, i32) {
    %c0_i32 = arith.constant 0 : i32
    %c0_i32_0 = arith.constant 0 : i32
    return %arg0, %c0_i32 : i32, i32
  }
  func.func @transform_1(%arg0: i32) -> (i32, i32) {
    %c0_i32 = arith.constant 0 : i32
    %c0_i32_0 = arith.constant 0 : i32
    %c0_i32_1 = arith.constant 0 : i32
    return %c0_i32, %c0_i32_0 : i32, i32
  }
  func.func @transform_2(%arg0: i32) -> (i32, i32) {
    %c0_i32 = arith.constant 0 : i32
    %c0_i32_0 = arith.constant 0 : i32
    %c0_i32_1 = arith.constant 0 : i32
    return %c0_i32, %c0_i32_0 : i32, i32
  }
  func.func @transform_3(%arg0: i32) -> (i32, i32) {
    %c0_i32 = arith.constant 0 : i32
    %c0_i32_0 = arith.constant 0 : i32
    %c0_i32_1 = arith.constant 0 : i32
    return %c0_i32, %c0_i32_0 : i32, i32
  }
  func.func @transform_4(%arg0: i32) -> (i32, i32) {
    %c0_i32 = arith.constant 0 : i32
    %c0_i32_0 = arith.constant 0 : i32
    %c0_i32_1 = arith.constant 0 : i32
    return %c0_i32, %c0_i32_0 : i32, i32
  }
  func.func @transform_5(%arg0: i32) -> (i32, i32) {
    %c0_i32 = arith.constant 0 : i32
    %c0_i32_0 = arith.constant 0 : i32
    %c0_i32_1 = arith.constant 0 : i32
    return %c0_i32, %c0_i32_0 : i32, i32
  }
  func.func @transform_6(%arg0: i32) -> (i32, i32) {
    %c0_i32 = arith.constant 0 : i32
    %c0_i32_0 = arith.constant 0 : i32
    %c0_i32_1 = arith.constant 0 : i32
    return %c0_i32, %c0_i32_0 : i32, i32
  }
  func.func @transform_7(%arg0: i32) -> (i32, i32) {
    %c0_i32 = arith.constant 0 : i32
    %c0_i32_0 = arith.constant 0 : i32
    %c0_i32_1 = arith.constant 0 : i32
    return %c0_i32, %c0_i32_0 : i32, i32
  }
  func.func @transform_8(%arg0: i32) -> (i32, i32) {
    %c0_i32 = arith.constant 0 : i32
    %c0_i32_0 = arith.constant 0 : i32
    %c0_i32_1 = arith.constant 0 : i32
    return %c0_i32, %c0_i32_0 : i32, i32
  }
  func.func @transform_9(%arg0: i32) -> (i32, i32) {
    %c0_i32 = arith.constant 0 : i32
    %c0_i32_0 = arith.constant 0 : i32
    %c0_i32_1 = arith.constant 0 : i32
    return %c0_i32, %c0_i32_0 : i32, i32
  }
  func.func @transform_10(%arg0: i32) -> (i32, i32) {
    %c0_i32 = arith.constant 0 : i32
    %c0_i32_0 = arith.constant 0 : i32
    %c0_i32_1 = arith.constant 0 : i32
    return %c0_i32, %c0_i32_0 : i32, i32
  }
  func.func @transform_11(%arg0: i32) -> (i32, i32) {
    %c0_i32 = arith.constant 0 : i32
    %c0_i32_0 = arith.constant 0 : i32
    %c0_i32_1 = arith.constant 0 : i32
    return %c0_i32, %c0_i32_0 : i32, i32
  }
  func.func @transform_12(%arg0: i32) -> (i32, i32) {
    %c0_i32 = arith.constant 0 : i32
    %c0_i32_0 = arith.constant 0 : i32
    %c0_i32_1 = arith.constant 0 : i32
    return %c0_i32, %c0_i32_0 : i32, i32
  }
  func.func @transform_13(%arg0: i32) -> (i32, i32) {
    %c0_i32 = arith.constant 0 : i32
    %c0_i32_0 = arith.constant 0 : i32
    return %arg0, %c0_i32 : i32, i32
  }
}

</mosaic_0001>

<bundles_post_ra>
// kernel: tpu_custom_call.1
= control target key start
LH: loop header
LB: loop body
LE: loop exit
PB: predicated region body
PF: predicated region fallthrough
CT: control target
= control target key end

     0   :  { %18 = vsyncpa [#allocation3], 0  ;;  %s2360_s0 = inlined_call_operand.hbm [shape: bf16[16,16], index: 0, kind: input, shape index: {}]   ;;  %s2361_s1 = inlined_call_operand.hbm [shape: bf16[16,32], index: 1, kind: input, shape index: {}]   ;;  %s2362_s2 = inlined_call_operand.hbm [shape: f32[1,32], index: 2, kind: input, shape index: {}]   ;;  %s2363_s3 = inlined_call_operand.vmem [shape: bf16[32,96], index: 3, kind: input, shape index: {}]   ;;  %s2364_s4 = inlined_call_operand.hbm [shape: f32[1,96], index: 4, kind: input, shape index: {}]   ;;  %s2365_s5 = inlined_call_operand.hbm [shape: bf16[32,32], index: 5, kind: input, shape index: {}]   ;;  %s2366_s6 = inlined_call_operand.hbm [shape: f32[1,32], index: 6, kind: input, shape index: {}]   ;;  %s2367_s7 = inlined_call_operand.vmem [shape: bf16[32,32], index: 7, kind: input, shape index: {}]   ;;  %s2368_s8 = inlined_call_operand.hbm [shape: f32[1,32], index: 8, kind: input, shape index: {}]   ;;  %s2369_s9 = inlined_call_operand.hbm [shape: bf16[32,32], index: 9, kind: input, shape index: {}]   ;;  %s2370_s10 = inlined_call_operand.vmem [shape: f32[1,32], index: 10, kind: input, shape index: {}]   ;;  %s2371_s11 = inlined_call_operand.vmem [shape: bf16[32,8], index: 11, kind: input, shape index: {}]   ;;  %s2372_s12 = inlined_call_operand.vmem [shape: f32[1,8], index: 12, kind: input, shape index: {}]   ;;  %s2373_s13 = inlined_call_operand.vmem [shape: f32[16,8], index: 13, kind: output, shape index: {}]  }
   0x1   :  { %19 = vsyncpa [#allocation5], 0 }
   0x2   :  { %20 = vsyncpa [#allocation8], 0 }
   0x3   :  { %21 = vsyncpa [#allocation11], 0 }
   0x4   :  { %22 = vsyncpa [#allocation14], 0  ;;  %s2023_s25 = smov [#allocation4]   ;;  %s2024_s27 = smov [#allocation7]  }
   0x5   :  { %s40_s26 = sshll.u32 %s2023_s25, 4  ;;  %s65_s28 = sshll.u32 %s2024_s27, 4  ;;  %s41_s26 = int_to_ptr.vmem [resolvable:$true] %s40_s26  ;;  %s66_s28 = int_to_ptr.vmem [resolvable:$true] %s65_s28 }
   0x6   :  { %s1861_s29 = scalar_lea.vmem %s41_s26, 128  ;;  %p1866_p1 = scmp.lt.s32.totalorder %s41_s26, %s41_s26 }
   0x7   :  { %p1862_p0 = scmp.ne.s32.totalorder %s41_s26, %s1861_s29  ;;  %p1867_p2 = scmp.lt.s32.totalorder %s1861_s29, %s1861_s29 }
   0x9   :  { %p1868_p3 = por %p1867_p2, %p1866_p1 }
   0xb   :  { %p1869_p4 = pnand %p1868_p3, %p1862_p0 }
   0xd   :  { %1872 = shalt.err (!%p1869_p4)
}
   0xe   :  { %s2025_s30 = smov 64   ;;  %s2026_s14 = smov 4  }
   0xf   :  { %46 = dma.hbm_to_vmem [thread:$0]  %s2361_s1, 128, %s41_s26, [#allocation5], %s2025_s30, %s2025_s30, %s2026_s14  }
  0x10   :  { %s1881_s17 = scalar_lea.vmem %s66_s28, 16  ;;  %s1885_s18 = scalar_lea.vmem %s66_s28, 32 }
  0x11   :  { %p1882_p5 = scmp.ne.s32.totalorder %s66_s28, %s1881_s17  ;;  %p1886_p6 = scmp.lt.s32.totalorder %s66_s28, %s66_s28 }
  0x12   :  { %p1887_p7 = scmp.lt.s32.totalorder %s1885_s18, %s1881_s17 }
  0x14   :  { %p1888_p8 = por %p1887_p7, %p1886_p6 }
  0x16   :  { %p1889_p9 = pnand %p1888_p8, %p1882_p5 }
  0x18   :  { %1892 = shalt.err (!%p1889_p9)
}
  0x19   :  { %68 = dma.hbm_to_vmem [thread:$0]  %s2364_s4, 16, %s66_s28, [#allocation8]  }
  0x1a   :  { %s2027_s21 = smov [#allocation10]   ;;  %s2028_s23 = smov [#allocation2]  }
  0x1b   :  { %s87_s22 = sshll.u32 %s2027_s21, 4  ;;  %s28_s24 = sshll.u32 %s2028_s23, 4  ;;  %s88_s22 = int_to_ptr.vmem [resolvable:$true] %s87_s22  ;;  %s29_s24 = int_to_ptr.vmem [resolvable:$true] %s28_s24 }
  0x1c   :  { %s1901_s25 = scalar_lea.vmem %s88_s22, 16  ;;  %s1905_s1 = scalar_lea.vmem %s88_s22, 32 }
  0x1d   :  { %p1902_p10 = scmp.ne.s32.totalorder %s88_s22, %s1901_s25  ;;  %p1906_p11 = scmp.lt.s32.totalorder %s88_s22, %s88_s22 }
  0x1e   :  { %p1907_p12 = scmp.lt.s32.totalorder %s1905_s1, %s1901_s25 }
  0x20   :  { %p1908_p13 = por %p1907_p12, %p1906_p11 }
  0x22   :  { %p1909_p0 = pnand %p1908_p13, %p1902_p10 }
  0x24   :  { %1912 = shalt.err (!%p1909_p0)
}
  0x25   :  { %90 = dma.hbm_to_vmem [thread:$0]  %s2366_s6, 16, %s88_s22, [#allocation11]  }
  0x26   :  { %s1921_s29 = scalar_lea.vmem %s29_s24, 128  ;;  %p1926_p2 = scmp.lt.s32.totalorder %s29_s24, %s29_s24 }
  0x27   :  { %p1922_p1 = scmp.ne.s32.totalorder %s29_s24, %s1921_s29  ;;  %p1927_p3 = scmp.lt.s32.totalorder %s1921_s29, %s1921_s29 }
  0x29   :  { %p1928_p4 = por %p1927_p3, %p1926_p2 }
  0x2b   :  { %p1929_p5 = pnand %p1928_p4, %p1922_p1 }
  0x2d   :  { %1932 = shalt.err (!%p1929_p5)
}
  0x2e   :  { %34 = dma.hbm_to_vmem [thread:$0]  %s2360_s0, 128, %s29_s24, [#allocation3], %s2025_s30, %s2025_s30, %s2026_s14  }
  0x2f   :  { %s2029_s15 = smov [#allocation6]   ;;  %s2030_s17 = smov [#allocation9]  }
  0x30   :  { %s53_s16 = sshll.u32 %s2029_s15, 4  ;;  %s74_s18 = sshll.u32 %s2030_s17, 4  ;;  %s54_s16 = int_to_ptr.vmem [resolvable:$true] %s53_s16  ;;  %s75_s18 = int_to_ptr.vmem [resolvable:$true] %s74_s18 }
  0x31   :  { %s1941_s6 = scalar_lea.vmem %s54_s16, 16  ;;  %s1945_s19 = scalar_lea.vmem %s54_s16, 32 }
  0x32   :  { %p1942_p6 = scmp.ne.s32.totalorder %s54_s16, %s1941_s6  ;;  %p1946_p7 = scmp.lt.s32.totalorder %s54_s16, %s54_s16 }
  0x33   :  { %p1947_p8 = scmp.lt.s32.totalorder %s1945_s19, %s1941_s6 }
  0x35   :  { %p1948_p9 = por %p1947_p8, %p1946_p7 }
  0x37   :  { %p1949_p10 = pnand %p1948_p9, %p1942_p6 }
  0x39   :  { %1952 = shalt.err (!%p1949_p10)
}
  0x3a   :  { %56 = dma.hbm_to_vmem [thread:$0]  %s2362_s2, 16, %s54_s16, [#allocation5]  }
  0x3b   :  { %s1961_s22 = scalar_lea.vmem %s75_s18, 256  ;;  %p1966_p12 = scmp.lt.s32.totalorder %s75_s18, %s75_s18 }
  0x3c   :  { %p1962_p11 = scmp.ne.s32.totalorder %s75_s18, %s1961_s22  ;;  %p1967_p13 = scmp.lt.s32.totalorder %s1961_s22, %s1961_s22 }
  0x3e   :  { %p1968_p0 = por %p1967_p13, %p1966_p12 }
  0x40   :  { %p1969_p1 = pnand %p1968_p0, %p1962_p11 }
  0x42   :  { %1972 = shalt.err (!%p1969_p1)
}
  0x43   :  { %80 = dma.hbm_to_vmem [thread:$0]  %s2365_s5, 256, %s75_s18, [#allocation8], %s2025_s30, %s2025_s30, %s2026_s14  }
  0x44   :  { %s2031_s24 = smov [#allocation12]   ;;  %s2032_s1 = smov [#allocation13]  }
  0x45   :  { %s99_s25 = sshll.u32 %s2031_s24, 4  ;;  %s108_s26 = sshll.u32 %s2032_s1, 4  ;;  %s100_s25 = int_to_ptr.vmem [resolvable:$true] %s99_s25  ;;  %s109_s26 = int_to_ptr.vmem [resolvable:$true] %s108_s26 }
  0x46   :  { %s1981_s2 = scalar_lea.vmem %s100_s25, 16  ;;  %s1985_s27 = scalar_lea.vmem %s100_s25, 32 }
  0x47   :  { %p1982_p2 = scmp.ne.s32.totalorder %s100_s25, %s1981_s2  ;;  %p1986_p3 = scmp.lt.s32.totalorder %s100_s25, %s100_s25 }
  0x48   :  { %p1987_p4 = scmp.lt.s32.totalorder %s1985_s27, %s1981_s2 }
  0x4a   :  { %p1988_p5 = por %p1987_p4, %p1986_p3 }
  0x4c   :  { %p1989_p6 = pnand %p1988_p5, %p1982_p2 }
  0x4e   :  { %1992 = shalt.err (!%p1989_p6)
}
  0x4f   :  { %102 = dma.hbm_to_vmem [thread:$0]  %s2368_s8, 16, %s100_s25, [#allocation11]  }
  0x50   :  { %s2001_s28 = scalar_lea.vmem %s109_s26, 256  ;;  %p2006_p8 = scmp.lt.s32.totalorder %s109_s26, %s109_s26 }
  0x51   :  { %p2002_p7 = scmp.ne.s32.totalorder %s109_s26, %s2001_s28  ;;  %p2007_p9 = scmp.lt.s32.totalorder %s2001_s28, %s2001_s28 }
  0x53   :  { %p2008_p10 = por %p2007_p9, %p2006_p8 }
  0x55   :  { %p2009_p11 = pnand %p2008_p10, %p2002_p7 }
  0x57   :  { %2012 = shalt.err (!%p2009_p11)
}
  0x58   :  { %114 = dma.hbm_to_vmem [thread:$0]  %s2369_s9, 256, %s109_s26, [#allocation14], %s2025_s30, %s2025_s30, %s2026_s14  }
  0x59   :  { %2013 = dma.done.wait [#allocation3], 128  }
  0x5a   :  { %2014 = vsyncadd [#allocation3], 4294967168 }
  0x5b   :  { %2015 = dma.done.wait [#allocation5], 144  }
  0x5c   :  { %2016 = vsyncadd [#allocation5], 4294967152 }
  0x5d   :  { %2017 = dma.done.wait [#allocation8], 272  }
  0x5e   :  { %2018 = vsyncadd [#allocation8], 4294967024 }
  0x5f   :  { %2019 = dma.done.wait [#allocation11], 32  }
  0x60   :  { %2020 = vsyncadd [#allocation11], 4294967264 }
  0x61   :  { %2021 = dma.done.wait [#allocation14], 256  }
  0x62   :  { %2022 = vsyncadd [#allocation14], 4294967040  ;;  %v2033_v0 = vmov 0.0   ;;  %vm2034_vm0 = vmmov 0   ;;  %v1797_v1 = vld [vmem:[#allocation4] sm:$0xff]   ;;  %v1798_v2 = vld [vmem:[#allocation2] sm:$0xff]  }
  0x63   :  { %1615 = vmatprep.subr.bf16.mxu0 %v2033_v0  ;;  %1617 = vmatprep.mubr.msk.bf16.mxu0 %vm2034_vm0, %v2033_v0  ;;  %vm168_vm1 = vcmask 130048   ;;  %v1799_v3 = vld [vmem:[%s2363_s3 + $0x8] sm:$0xff]   ;;  %v1800_v4 = vld [vmem:[%s2363_s3] sm:$0xff]   ;;  %v1520_v5 = vld [vmem:[#allocation6] ss:$0 sm:$0xff]  ;;  %vm251_vm4 = vcmask 261120  }
  0x64   :  { %1621 = vmatprep.subr.bf16.mxu1 %v2033_v0  ;;  %1625 = vmatprep.mubr.msk.bf16.mxu1 %vm2034_vm0, %v2033_v0  ;;  %v1526_v25 = vld [vmem:[#allocation7] ss:$0 sm:$0xff]  ;;  %s2035_s3 = smov 96   ;;  %vm301_vm5 = vcmask 64512   ;;  %s2036_s17 = smov 88   ;;  %vm426_vm6 = vcmask 1043456  }
  0x65   :  { %1616 = vmatpush3.bf16.msra.mxu0 %v1797_v1  ;;  %1622 = vmatpush3.bf16.msra.mxu1 %v1799_v3  ;;  %s2038_s18 = smov 56   ;;  %s2039_s6 = smov 80   ;;  %vm1206_vm7 = vcmask 195584  }
  0x66   :  { %1629 = vmatprep.subr.bf16.mxu0 %v2033_v0  ;;  %1623 = vmatprep.subr.bf16.mxu1 %v2033_v0  ;;  %s2040_s19 = smov 112   ;;  %s2041_s20 = smov 48  }
  0x67   :  { %s2042_s21 = smov 72   ;;  %s2043_s22 = smov 104  }
  0x68   :  { %1618 = vmatmul.mubr.msk.bf16.vlgmr.msra.gmra.mxu0 %vm168_vm1, %v1798_v2  ;;  %s2044_s0 = smov 40   ;;  %s2045_s23 = smov 8  }
  0x69   :  { %1631 = vmatprep.mubr.msk.bf16.mxu0 %vm2034_vm0, %v2033_v0  ;;  %1624 = vmatpush3.bf16.msra.mxu1 %v1800_v4  ;;  %s2046_s24 = smov 16   ;;  %s2047_s25 = smov 24  }
  0x6a   :  { %1635 = vmatprep.subr.bf16.mxu1 %v2033_v0 }
 0x128   :  { %v206_v6 = vpop.f32.mrf.mxu0 }
 0x129   :  { %v207_v7 = vadd.f32 %v1520_v5, %v206_v6 }
 0x12a   :  { %v1619_v8 = vpop.f32.mrf.mxu0 }
 0x12b   :  { %v215_v9 = vmin.f32 %v207_v7, 0.0  ;;  %vm213_vm2 = vcmp.gt.f32.partialorder %v207_v7, 0.0 }
 0x12c   :  { %v209_v10 = vpop.f32.mrf.mxu0 }
 0x12d   :  { %v217_v11 = vmul.f32 1.442695, %v215_v9  ;;  %v210_v12 = vadd.f32 %v1520_v5, %v209_v10 }
 0x12e   :  { %v1620_v13 = vpop.f32.mrf.mxu0 }
 0x12f   :  { %1809 = vpow2.f32 %v217_v11  ;;  %v216_v14 = vmin.f32 %v210_v12, 0.0  ;;  %vm214_vm3 = vcmp.gt.f32.partialorder %v210_v12, 0.0 }
 0x131   :  { %v219_v15 = vmul.f32 1.442695, %v216_v14 }
 0x133   :  { %1811 = vpow2.f32 %v219_v15 }
 0x13c   :  { %v1810_v16 = vpop.eup %1809 }
 0x13d   :  { %v1524_v17 = vadd.f32 -1.0, %v1810_v16 }
 0x13f   :  { %v223_v19 = vmul.f32 1.6732632, %v1524_v17 }
 0x140   :  { %v1812_v18 = vpop.eup %1811 }
 0x141   :  { %v1525_v20 = vadd.f32 -1.0, %v1812_v18  ;;  %v225_v22 = vsel %vm213_vm2, %v207_v7, %v223_v19 }
 0x143   :  { %v224_v21 = vmul.f32 1.6732632, %v1525_v20 }
 0x145   :  { %v226_v23 = vsel %vm214_vm3, %v210_v12, %v224_v21 }
 0x146   :  { %v227_v24 = vpack.c.bf16 %v226_v23, %v225_v22 }
 0x148   :  { %1626 = vmatmul.mubr.msk.bf16.vlgmr.msra.gmra.mxu1 %vm251_vm4, %v227_v24 }
 0x149   :  { %1637 = vmatprep.mubr.msk.bf16.mxu1 %vm2034_vm0, %v2033_v0 }
 0x208   :  { %v289_v26 = vpop.f32.mrf.mxu1 }
 0x209   :  { %v290_v27 = vadd.f32 %v1526_v25, %v289_v26 }
 0x20a   :  { %v1627_v28 = vpop.f32.mrf.mxu1 }
 0x20b   :  { %v2175_v29 = vpack.c.bf16 %v290_v27, %v290_v27 }
 0x20c   :  { %v292_v30 = vpop.f32.mrf.mxu1 }
 0x20d   :  { %v293_v31 = vadd.f32 %v1526_v25, %v292_v30  ;;  %299 = vrot.lane.b32.xlu0 %v2175_v29, %s2035_s3 }
 0x20e   :  { %v1628_v32 = vpop.f32.mrf.mxu1 }
 0x20f   :  { %v2178_v33 = vpack.c.bf16 %v293_v31, %v293_v31 }
 0x211   :  { %349 = vrot.lane.b32.xlu0 %v2178_v33, %s2035_s3 }
 0x27f   :  { %v300_v34 = vpop.permute.xlu0 %299 }
 0x280   :  { %v306_v35 = vsel %vm301_vm5, %v300_v34, 0 }
 0x281   :  { %1630 = vmatpush3.bf16.xpose.msra.mxu0 %v306_v35 }
 0x282   :  { %1641 = vmatprep.subr.bf16.mxu0 %v2033_v0 }
 0x283   :  { %v350_v36 = vpop.permute.xlu0 %349 }
 0x284   :  { %v355_v37 = vsel %vm301_vm5, %v350_v36, 0 }
 0x285   :  { %1636 = vmatpush3.bf16.xpose.msra.mxu1 %v355_v37 }
 0x286   :  { %1647 = vmatprep.subr.bf16.mxu1 %v2033_v0 }
 0x288   :  { %1632 = vmatmul.mubr.msk.bf16.vlgmr.msra.gmra.mxu0 %vm301_vm5, %v2175_v29 }
 0x289   :  { %1643 = vmatprep.mubr.msk.bf16.mxu0 %vm2034_vm0, %v2033_v0 }
 0x28c   :  { %1638 = vmatmul.mubr.msk.bf16.vlgmr.msra.gmra.mxu1 %vm301_vm5, %v2178_v33 }
 0x28d   :  { %1649 = vmatprep.mubr.msk.bf16.mxu1 %vm2034_vm0, %v2033_v0 }
 0x348   :  { %v342_v38 = vpop.f32.mrf.mxu0 }
 0x349   :  { %v397_v39 = vsel %vm301_vm5, %v342_v38, -inf }
 0x34a   :  { %398 = vmax.xlane.f32.xlu1 %v397_v39  ;;  %v1633_v40 = vpop.f32.mrf.mxu0 }
 0x34c   :  { %v345_v41 = vpop.f32.mrf.mxu0  ;;  %v391_v42 = vpop.f32.mrf.mxu1 }
 0x34d   :  { %v400_v43 = vsel %vm301_vm5, %v391_v42, -inf }
 0x34e   :  { %v1639_v44 = vpop.f32.mrf.mxu1  ;;  %401 = vmax.xlane.f32.xlu1 %v400_v43  ;;  %v1634_v45 = vpop.f32.mrf.mxu0 }
 0x350   :  { %v394_v46 = vpop.f32.mrf.mxu1 }
 0x352   :  { %v1640_v47 = vpop.f32.mrf.mxu1 }
 0x35f   :  { %421 = vrot.lane.b32.xlu1 %v2175_v29, %s2025_s30 }
 0x363   :  { %470 = vrot.lane.b32.xlu1 %v2178_v33, %s2025_s30  ;;  %s2037_s30 = smov 120  }
 0x367   :  { %520 = vrot.lane.b32.xlu1 %v2175_v29, %s2036_s17 }
 0x3d3   :  { %v399_v48 = vpop.xlane.xlu1 %398 }
 0x3d4   :  { %v403_v49 = vsub.f32 %v342_v38, %v399_v48 }
 0x3d6   :  { %v405_v50 = vmul.f32 1.442695, %v403_v49 }
 0x3d7   :  { %v402_v51 = vpop.xlane.xlu1 %401 }
 0x3d8   :  { %1813 = vpow2.f32 %v405_v50  ;;  %v404_v52 = vsub.f32 %v391_v42, %v402_v51 }
 0x3da   :  { %v407_v53 = vmul.f32 1.442695, %v404_v52 }
 0x3db   :  { %v422_v54 = vpop.permute.xlu1 %421 }
 0x3dc   :  { %1815 = vpow2.f32 %v407_v53  ;;  %v428_v55 = vsel %vm426_vm6, %v422_v54, 0 }
 0x3dd   :  { %1642 = vmatpush3.bf16.msra.mxu0 %v428_v55 }
 0x3de   :  { %1653 = vmatprep.subr.bf16.mxu0 %v2033_v0 }
 0x3df   :  { %v471_v56 = vpop.permute.xlu1 %470 }
 0x3e0   :  { %v476_v57 = vsel %vm426_vm6, %v471_v56, 0 }
 0x3e1   :  { %1648 = vmatpush3.bf16.msra.mxu1 %v476_v57 }
 0x3e2   :  { %1659 = vmatprep.subr.bf16.mxu1 %v2033_v0 }
 0x3e3   :  { %v521_v62 = vpop.permute.xlu1 %520 }
 0x3e4   :  { %v526_v6 = vsel %vm301_vm5, %v521_v62, 0 }
 0x3e5   :  { %v1814_v58 = vpop.eup %1813 }
 0x3e6   :  { %v409_v59 = vsel %vm301_vm5, %v1814_v58, 0.0 }
 0x3e7   :  { %410 = vadd.xlane.f32.xlu0 %v409_v59 }
 0x3e9   :  { %v1816_v60 = vpop.eup %1815 }
 0x3ea   :  { %v412_v61 = vsel %vm301_vm5, %v1816_v60, 0.0 }
 0x3eb   :  { %413 = vadd.xlane.f32.xlu1 %v412_v61 }
 0x3fc   :  { %570 = vrot.lane.b32.xlu1 %v2178_v33, %s2036_s17 }
 0x3fd   :  { %518 = vrot.lane.b32.xlu0 %v2175_v29, %s2037_s30 }
 0x400   :  { %568 = vrot.lane.b32.xlu1 %v2178_v33, %s2037_s30 }
 0x470   :  { %v411_v63 = vpop.xlane.xlu0 %410 }
 0x471   :  { %1817 = vrcp.f32 %v411_v63 }
 0x474   :  { %v414_v1 = vpop.xlane.xlu1 %413  ;;  %v519_v11 = vpop.permute.xlu0 %518 }
 0x475   :  { %1819 = vrcp.f32 %v414_v1 }
 0x478   :  { %v571_v8 = vpop.permute.xlu1 %570 }
 0x479   :  { %v576_v10 = vsel %vm301_vm5, %v571_v8, 0 }
 0x47c   :  { %v569_v12 = vpop.permute.xlu1 %568 }
 0x47e   :  { %v1818_v2 = vpop.eup %1817 }
 0x47f   :  { %v417_v3 = vmul.f32 %v1818_v2, %v1814_v58 }
 0x481   :  { %v419_v4 = vpack.c.bf16 %v417_v3, %v417_v3 }
 0x482   :  { %v1820_v5 = vpop.eup %1819 }
 0x483   :  { %1644 = vmatmul.mubr.msk.bf16.vlgmr.msra.gmra.mxu0 %vm301_vm5, %v419_v4  ;;  %v418_v7 = vmul.f32 %v1820_v5, %v1816_v60 }
 0x484   :  { %1654 = vmatpush3.bf16.xpose.msra.mxu0 %v526_v6  ;;  %1655 = vmatprep.mubr.msk.bf16.mxu0 %vm2034_vm0, %v2033_v0 }
 0x485   :  { %v420_v9 = vpack.c.bf16 %v418_v7, %v418_v7  ;;  %1665 = vmatprep.subr.bf16.mxu0 %v2033_v0 }
 0x487   :  { %1650 = vmatmul.mubr.msk.bf16.vlgmr.msra.gmra.mxu1 %vm301_vm5, %v420_v9 }
 0x488   :  { %1660 = vmatpush3.bf16.xpose.msra.mxu1 %v576_v10  ;;  %1661 = vmatprep.mubr.msk.bf16.mxu1 %vm2034_vm0, %v2033_v0 }
 0x489   :  { %1671 = vmatprep.subr.bf16.mxu1 %v2033_v0 }
 0x48b   :  { %1656 = vmatmul.mubr.msk.bf16.vlgmr.msra.gmra.mxu0 %vm301_vm5, %v519_v11 }
 0x48c   :  { %1667 = vmatprep.mubr.msk.bf16.mxu0 %vm2034_vm0, %v2033_v0 }
 0x48f   :  { %1662 = vmatmul.mubr.msk.bf16.vlgmr.msra.gmra.mxu1 %vm301_vm5, %v569_v12 }
 0x490   :  { %1673 = vmatprep.mubr.msk.bf16.mxu1 %vm2034_vm0, %v2033_v0 }
 0x543   :  { %v2225_v13 = vpop.f32.mrf.mxu0 }
 0x545   :  { %v1645_v14 = vpop.f32.mrf.mxu0 }
 0x547   :  { %v467_v15 = vpop.f32.mrf.mxu0  ;;  %v2227_v16 = vpop.f32.mrf.mxu1 }
 0x549   :  { %v1646_v17 = vpop.f32.mrf.mxu0  ;;  %v1651_v18 = vpop.f32.mrf.mxu1 }
 0x54b   :  { %v515_v19 = vpop.f32.mrf.mxu1  ;;  %v562_v20 = vpop.f32.mrf.mxu0 }
 0x54c   :  { %v618_v21 = vsel %vm301_vm5, %v562_v20, -inf }
 0x54d   :  { %v1652_v22 = vpop.f32.mrf.mxu1  ;;  %619 = vmax.xlane.f32.xlu1 %v618_v21  ;;  %v1657_v23 = vpop.f32.mrf.mxu0 }
 0x54f   :  { %v565_v24 = vpop.f32.mrf.mxu0  ;;  %v612_v25 = vpop.f32.mrf.mxu1 }
 0x550   :  { %v621_v26 = vsel %vm301_vm5, %v612_v25, -inf }
 0x551   :  { %622 = vmax.xlane.f32.xlu0 %v621_v26  ;;  %v1658_v27 = vpop.f32.mrf.mxu0  ;;  %v1663_v28 = vpop.f32.mrf.mxu1 }
 0x553   :  { %v615_v30 = vpop.f32.mrf.mxu1 }
 0x555   :  { %v1664_v31 = vpop.f32.mrf.mxu1 }
 0x55e   :  { %642 = vrot.lane.b32.xlu1 %v2175_v29, %s2038_s18 }
 0x562   :  { %740 = vrot.lane.b32.xlu1 %v2175_v29, %s2039_s6 }
 0x567   :  { %690 = vrot.lane.b32.xlu0 %v2178_v33, %s2038_s18 }
 0x56b   :  { %738 = vrot.lane.b32.xlu0 %v2175_v29, %s2040_s19 }
 0x5d6   :  { %v620_v32 = vpop.xlane.xlu1 %619 }
 0x5d7   :  { %v624_v34 = vsub.f32 %v562_v20, %v620_v32 }
 0x5d9   :  { %v626_v35 = vmul.f32 1.442695, %v624_v34 }
 0x5da   :  { %v623_v36 = vpop.xlane.xlu0 %622  ;;  %v643_v37 = vpop.permute.xlu1 %642 }
 0x5db   :  { %1821 = vpow2.f32 %v626_v35  ;;  %v625_v38 = vsub.f32 %v612_v25, %v623_v36  ;;  %v648_v39 = vsel %vm426_vm6, %v643_v37, 0 }
 0x5dc   :  { %1666 = vmatpush3.bf16.msra.mxu0 %v648_v39 }
 0x5dd   :  { %v628_v40 = vmul.f32 1.442695, %v625_v38  ;;  %1677 = vmatprep.subr.bf16.mxu0 %v2033_v0 }
 0x5de   :  { %v691_v41 = vpop.permute.xlu0 %690  ;;  %v741_v47 = vpop.permute.xlu1 %740 }
 0x5df   :  { %1823 = vpow2.f32 %v628_v40  ;;  %v696_v42 = vsel %vm426_vm6, %v691_v41, 0  ;;  %v746_v54 = vsel %vm301_vm5, %v741_v47, 0 }
 0x5e0   :  { %1672 = vmatpush3.bf16.msra.mxu1 %v696_v42 }
 0x5e1   :  { %1683 = vmatprep.subr.bf16.mxu1 %v2033_v0 }
 0x5e2   :  { %v739_v59 = vpop.permute.xlu0 %738 }
 0x5e8   :  { %v1822_v43 = vpop.eup %1821 }
 0x5e9   :  { %v630_v44 = vsel %vm301_vm5, %v1822_v43, 0.0 }
 0x5ea   :  { %631 = vadd.xlane.f32.xlu1 %v630_v44 }
 0x5ec   :  { %v1824_v45 = vpop.eup %1823 }
 0x5ed   :  { %v633_v46 = vsel %vm301_vm5, %v1824_v45, 0.0 }
 0x5ee   :  { %634 = vadd.xlane.f32.xlu1 %v633_v46 }
 0x5ff   :  { %790 = vrot.lane.b32.xlu1 %v2178_v33, %s2039_s6 }
 0x603   :  { %788 = vrot.lane.b32.xlu1 %v2178_v33, %s2040_s19 }
 0x673   :  { %v632_v48 = vpop.xlane.xlu1 %631 }
 0x674   :  { %1825 = vrcp.f32 %v632_v48 }
 0x677   :  { %v635_v49 = vpop.xlane.xlu1 %634 }
 0x678   :  { %1827 = vrcp.f32 %v635_v49 }
 0x67b   :  { %v791_v56 = vpop.permute.xlu1 %790 }
 0x67c   :  { %v796_v58 = vsel %vm301_vm5, %v791_v56, 0 }
 0x67f   :  { %v789_v60 = vpop.permute.xlu1 %788 }
 0x681   :  { %v1826_v50 = vpop.eup %1825 }
 0x682   :  { %v638_v51 = vmul.f32 %v1826_v50, %v1822_v43 }
 0x684   :  { %v640_v52 = vpack.c.bf16 %v638_v51, %v638_v51 }
 0x685   :  { %v1828_v53 = vpop.eup %1827 }
 0x686   :  { %1668 = vmatmul.mubr.msk.bf16.vlgmr.msra.gmra.mxu0 %vm301_vm5, %v640_v52  ;;  %v639_v55 = vmul.f32 %v1828_v53, %v1824_v45 }
 0x687   :  { %1678 = vmatpush3.bf16.xpose.msra.mxu0 %v746_v54  ;;  %1679 = vmatprep.mubr.msk.bf16.mxu0 %vm2034_vm0, %v2033_v0 }
 0x688   :  { %v641_v57 = vpack.c.bf16 %v639_v55, %v639_v55  ;;  %1689 = vmatprep.subr.bf16.mxu0 %v2033_v0 }
 0x68a   :  { %1674 = vmatmul.mubr.msk.bf16.vlgmr.msra.gmra.mxu1 %vm301_vm5, %v641_v57 }
 0x68b   :  { %1684 = vmatpush3.bf16.xpose.msra.mxu1 %v796_v58  ;;  %1685 = vmatprep.mubr.msk.bf16.mxu1 %vm2034_vm0, %v2033_v0 }
 0x68c   :  { %1695 = vmatprep.subr.bf16.mxu1 %v2033_v0 }
 0x68e   :  { %1680 = vmatmul.mubr.msk.bf16.vlgmr.msra.gmra.mxu0 %vm301_vm5, %v739_v59 }
 0x68f   :  { %1691 = vmatprep.mubr.msk.bf16.mxu0 %vm2034_vm0, %v2033_v0 }
 0x692   :  { %1686 = vmatmul.mubr.msk.bf16.vlgmr.msra.gmra.mxu1 %vm301_vm5, %v789_v60 }
 0x693   :  { %1697 = vmatprep.mubr.msk.bf16.mxu1 %vm2034_vm0, %v2033_v0 }
 0x746   :  { %v2259_v61 = vpop.f32.mrf.mxu0 }
 0x748   :  { %v1669_v62 = vpop.f32.mrf.mxu0 }
 0x74a   :  { %v687_v63 = vpop.f32.mrf.mxu0  ;;  %v2261_v1 = vpop.f32.mrf.mxu1 }
 0x74b   :  { %v1782_v2 = vpack.i.bf16 %v2261_v1, %v2259_v61 }
 0x74c   :  { %v1670_v3 = vpop.f32.mrf.mxu0  ;;  %v1675_v4 = vpop.f32.mrf.mxu1 }
 0x74e   :  { %v735_v5 = vpop.f32.mrf.mxu1  ;;  %v782_v6 = vpop.f32.mrf.mxu0 }
 0x74f   :  { %v838_v7 = vsel %vm301_vm5, %v782_v6, -inf }
 0x750   :  { %v1676_v8 = vpop.f32.mrf.mxu1  ;;  %839 = vmax.xlane.f32.xlu0 %v838_v7  ;;  %v1681_v9 = vpop.f32.mrf.mxu0 }
 0x752   :  { %v785_v10 = vpop.f32.mrf.mxu0  ;;  %v832_v11 = vpop.f32.mrf.mxu1 }
 0x753   :  { %v841_v12 = vsel %vm301_vm5, %v832_v11, -inf }
 0x754   :  { %842 = vmax.xlane.f32.xlu1 %v841_v12  ;;  %v1682_v14 = vpop.f32.mrf.mxu0  ;;  %v1687_v15 = vpop.f32.mrf.mxu1 }
 0x756   :  { %v835_v17 = vpop.f32.mrf.mxu1 }
 0x758   :  { %v1688_v18 = vpop.f32.mrf.mxu1 }
 0x765   :  { %862 = vrot.lane.b32.xlu1 %v2175_v29, %s2041_s20 }
 0x769   :  { %960 = vrot.lane.b32.xlu1 %v2175_v29, %s2042_s21 }
 0x76d   :  { %1010 = vrot.lane.b32.xlu1 %v2178_v33, %s2042_s21 }
 0x771   :  { %1008 = vrot.lane.b32.xlu1 %v2178_v33, %s2043_s22 }
 0x7d9   :  { %v840_v19 = vpop.xlane.xlu0 %839 }
 0x7da   :  { %v844_v20 = vsub.f32 %v782_v6, %v840_v19 }
 0x7dc   :  { %v846_v21 = vmul.f32 1.442695, %v844_v20 }
 0x7dd   :  { %v843_v22 = vpop.xlane.xlu1 %842 }
 0x7de   :  { %1829 = vpow2.f32 %v846_v21  ;;  %v845_v23 = vsub.f32 %v832_v11, %v843_v22 }
 0x7e0   :  { %v848_v24 = vmul.f32 1.442695, %v845_v23 }
 0x7e1   :  { %v863_v25 = vpop.permute.xlu1 %862 }
 0x7e2   :  { %1831 = vpow2.f32 %v848_v24  ;;  %v868_v26 = vsel %vm426_vm6, %v863_v25, 0 }
 0x7e3   :  { %1690 = vmatpush3.bf16.msra.mxu0 %v868_v26 }
 0x7e4   :  { %1701 = vmatprep.subr.bf16.mxu0 %v2033_v0 }
 0x7e5   :  { %v961_v38 = vpop.permute.xlu1 %960 }
 0x7e6   :  { %v966_v42 = vsel %vm301_vm5, %v961_v38, 0 }
 0x7e9   :  { %v1011_v44 = vpop.permute.xlu1 %1010 }
 0x7ea   :  { %v1016_v46 = vsel %vm301_vm5, %v1011_v44, 0 }
 0x7eb   :  { %v1830_v27 = vpop.eup %1829 }
 0x7ec   :  { %v850_v28 = vsel %vm301_vm5, %v1830_v27, 0.0 }
 0x7ed   :  { %851 = vadd.xlane.f32.xlu0 %v850_v28  ;;  %v1009_v48 = vpop.permute.xlu1 %1008  ;;  %v1802_v28 = vld [vmem:[#allocation9] sm:$0xff]  }
 0x7ef   :  { %v1832_v30 = vpop.eup %1831 }
 0x7f0   :  { %v853_v31 = vsel %vm301_vm5, %v1832_v30, 0.0 }
 0x7f1   :  { %854 = vadd.xlane.f32.xlu0 %v853_v31 }
 0x807   :  { %910 = vrot.lane.b32.xlu0 %v2178_v33, %s2041_s20 }
 0x80b   :  { %958 = vrot.lane.b32.xlu0 %v2175_v29, %s2043_s22 }
 0x876   :  { %v852_v32 = vpop.xlane.xlu0 %851 }
 0x877   :  { %1833 = vrcp.f32 %v852_v32 }
 0x87a   :  { %v855_v34 = vpop.xlane.xlu0 %854 }
 0x87b   :  { %1835 = vrcp.f32 %v855_v34 }
 0x87e   :  { %v911_v35 = vpop.permute.xlu0 %910 }
 0x87f   :  { %v916_v36 = vsel %vm426_vm6, %v911_v35, 0 }
 0x880   :  { %1696 = vmatpush3.bf16.msra.mxu1 %v916_v36 }
 0x881   :  { %1707 = vmatprep.subr.bf16.mxu1 %v2033_v0 }
 0x882   :  { %v959_v47 = vpop.permute.xlu0 %958 }
 0x884   :  { %v1834_v37 = vpop.eup %1833 }
 0x885   :  { %v858_v39 = vmul.f32 %v1834_v37, %v1830_v27  ;;  %v1801_v27 = vld [vmem:[#allocation9 + $0x8] sm:$0xff]  }
 0x887   :  { %v860_v40 = vpack.c.bf16 %v858_v39, %v858_v39 }
 0x888   :  { %v1836_v41 = vpop.eup %1835 }
 0x889   :  { %1692 = vmatmul.mubr.msk.bf16.vlgmr.msra.gmra.mxu0 %vm301_vm5, %v860_v40  ;;  %v859_v43 = vmul.f32 %v1836_v41, %v1832_v30 }
 0x88a   :  { %1702 = vmatpush3.bf16.xpose.msra.mxu0 %v966_v42  ;;  %1703 = vmatprep.mubr.msk.bf16.mxu0 %vm2034_vm0, %v2033_v0 }
 0x88b   :  { %v861_v45 = vpack.c.bf16 %v859_v43, %v859_v43  ;;  %1713 = vmatprep.subr.bf16.mxu0 %v2033_v0 }
 0x88d   :  { %1698 = vmatmul.mubr.msk.bf16.vlgmr.msra.gmra.mxu1 %vm301_vm5, %v861_v45 }
 0x88e   :  { %1708 = vmatpush3.bf16.xpose.msra.mxu1 %v1016_v46  ;;  %1709 = vmatprep.mubr.msk.bf16.mxu1 %vm2034_vm0, %v2033_v0 }
 0x88f   :  { %1719 = vmatprep.subr.bf16.mxu1 %v2033_v0 }
 0x891   :  { %1704 = vmatmul.mubr.msk.bf16.vlgmr.msra.gmra.mxu0 %vm301_vm5, %v959_v47 }
 0x892   :  { %1715 = vmatprep.mubr.msk.bf16.mxu0 %vm2034_vm0, %v2033_v0 }
 0x895   :  { %1710 = vmatmul.mubr.msk.bf16.vlgmr.msra.gmra.mxu1 %vm301_vm5, %v1009_v48 }
 0x896   :  { %1721 = vmatprep.mubr.msk.bf16.mxu1 %vm2034_vm0, %v2033_v0 }
 0x949   :  { %v904_v49 = vpop.f32.mrf.mxu0 }
 0x94b   :  { %v1693_v50 = vpop.f32.mrf.mxu0 }
 0x94d   :  { %v907_v51 = vpop.f32.mrf.mxu0  ;;  %v952_v52 = vpop.f32.mrf.mxu1 }
 0x94e   :  { %v1787_v7 = vpack.i.bf16 %v952_v52, %v904_v49 }
 0x94f   :  { %v1694_v53 = vpop.f32.mrf.mxu0  ;;  %v1699_v54 = vpop.f32.mrf.mxu1 }
 0x951   :  { %v955_v55 = vpop.f32.mrf.mxu1  ;;  %v1002_v56 = vpop.f32.mrf.mxu0 }
 0x952   :  { %v1058_v57 = vsel %vm301_vm5, %v1002_v56, -inf }
 0x953   :  { %v1700_v58 = vpop.f32.mrf.mxu1  ;;  %1059 = vmax.xlane.f32.xlu0 %v1058_v57  ;;  %v1705_v59 = vpop.f32.mrf.mxu0  ;;  %v1546_v57 = vld [vmem:[#allocation10] ss:$0 sm:$0xff] }
 0x955   :  { %v1005_v60 = vpop.f32.mrf.mxu0  ;;  %v1052_v62 = vpop.f32.mrf.mxu1 }
 0x956   :  { %v1061_v63 = vsel %vm301_vm5, %v1052_v62, -inf }
 0x957   :  { %1062 = vmax.xlane.f32.xlu1 %v1061_v63  ;;  %v1706_v3 = vpop.f32.mrf.mxu0  ;;  %v1711_v4 = vpop.f32.mrf.mxu1 }
 0x958   :  { %v1805_v4 = vld [vmem:[#allocation13 + $0x8] sm:$0xff]  }
 0x959   :  { %v1055_v5 = vpop.f32.mrf.mxu1 }
 0x95a   :  { %v1806_v5 = vld [vmem:[#allocation13] sm:$0xff]  }
 0x95b   :  { %v1712_v6 = vpop.f32.mrf.mxu1 }
 0x95c   :  { %v1550_v6 = vld [vmem:[#allocation12] ss:$0 sm:$0xff] }
 0x968   :  { %1082 = vrot.lane.b32.xlu1 %v2175_v29, %s2044_s0 }
 0x96c   :  { %1783 = vrot.lane.b32.xlu1 %v1782_v2, %s2045_s23 }
 0x970   :  { %1788 = vrot.lane.b32.xlu1 %v1787_v7, %s2046_s24 }
 0x9dc   :  { %v1060_v8 = vpop.xlane.xlu0 %1059 }
 0x9dd   :  { %v1064_v9 = vsub.f32 %v1002_v56, %v1060_v8 }
 0x9df   :  { %v1066_v10 = vmul.f32 1.442695, %v1064_v9 }
 0x9e0   :  { %v1063_v11 = vpop.xlane.xlu1 %1062 }
 0x9e1   :  { %1837 = vpow2.f32 %v1066_v10  ;;  %v1065_v12 = vsub.f32 %v1052_v62, %v1063_v11 }
 0x9e3   :  { %v1068_v14 = vmul.f32 1.442695, %v1065_v12 }
 0x9e4   :  { %v1083_v15 = vpop.permute.xlu1 %1082 }
 0x9e5   :  { %1839 = vpow2.f32 %v1068_v14  ;;  %v1088_v17 = vsel %vm426_vm6, %v1083_v15, 0 }
 0x9e6   :  { %1714 = vmatpush3.bf16.msra.mxu0 %v1088_v17 }
 0x9e7   :  { %1725 = vmatprep.subr.bf16.mxu0 %v2033_v0 }
 0x9e8   :  { %v1784_v40 = vpop.permute.xlu1 %1783 }
 0x9e9   :  { %v1786_v42 = vunpack.i.h.bf16 %v1784_v40  ;;  %v1785_v43 = vunpack.i.l.bf16 %v1784_v40 }
 0x9eb   :  { %v1203_v47 = vsel %vm301_vm5, %v2227_v16, %v1786_v42  ;;  %v1202_v48 = vsel %vm301_vm5, %v2225_v13, %v1785_v43  ;;  %v1803_v16 = vld [vmem:[%s2367_s7 + $0x8] sm:$0xff]   ;;  %v1804_v13 = vld [vmem:[%s2367_s7] sm:$0xff]  }
 0x9ec   :  { %v1789_v41 = vpop.permute.xlu1 %1788 }
 0x9ed   :  { %v1791_v44 = vunpack.i.h.bf16 %v1789_v41  ;;  %v1790_v45 = vunpack.i.l.bf16 %v1789_v41 }
 0x9ee   :  { %v1838_v29 = vpop.eup %1837 }
 0x9ef   :  { %v1070_v61 = vsel %vm301_vm5, %v1838_v29, 0.0  ;;  %v1205_v51 = vsel %vm168_vm1, %v1203_v47, %v1791_v44  ;;  %v1204_v52 = vsel %vm168_vm1, %v1202_v48, %v1790_v45 }
 0x9f0   :  { %1071 = vadd.xlane.f32.xlu0 %v1070_v61 }
 0x9f2   :  { %v1840_v1 = vpop.eup %1839 }
 0x9f3   :  { %v1073_v2 = vsel %vm301_vm5, %v1840_v1, 0.0 }
 0x9f4   :  { %1074 = vadd.xlane.f32.xlu0 %v1073_v2 }
 0xa0a   :  { %1130 = vrot.lane.b32.xlu0 %v2178_v33, %s2044_s0 }
 0xa79   :  { %v1072_v18 = vpop.xlane.xlu0 %1071 }
 0xa7a   :  { %1841 = vrcp.f32 %v1072_v18 }
 0xa7d   :  { %v1075_v19 = vpop.xlane.xlu0 %1074 }
 0xa7e   :  { %1843 = vrcp.f32 %v1075_v19 }
 0xa81   :  { %v1131_v20 = vpop.permute.xlu0 %1130 }
 0xa82   :  { %v1136_v21 = vsel %vm426_vm6, %v1131_v20, 0 }
 0xa83   :  { %1720 = vmatpush3.bf16.msra.mxu1 %v1136_v21 }
 0xa84   :  { %1733 = vmatprep.subr.bf16.mxu1 %v2033_v0 }
 0xa87   :  { %v1842_v22 = vpop.eup %1841 }
 0xa88   :  { %v1078_v23 = vmul.f32 %v1842_v22, %v1838_v29 }
 0xa8a   :  { %v1080_v24 = vpack.c.bf16 %v1078_v23, %v1078_v23 }
 0xa8b   :  { %v1844_v25 = vpop.eup %1843 }
 0xa8c   :  { %1716 = vmatmul.mubr.msk.bf16.vlgmr.msra.gmra.mxu0 %vm301_vm5, %v1080_v24  ;;  %v1079_v26 = vmul.f32 %v1844_v25, %v1840_v1  ;;  %v1807_v24 = vld [vmem:[%s2371_s11 + $0x8] sm:$0xff]   ;;  %v1808_v25 = vld [vmem:[%s2371_s11] sm:$0xff]  }
 0xa8d   :  { %1729 = vmatprep.mubr.msk.bf16.mxu0 %vm2034_vm0, %v2033_v0  ;;  %1726 = vmatpush3.bf16.msra.mxu0 %v1801_v27 }
 0xa8e   :  { %v1081_v33 = vpack.c.bf16 %v1079_v26, %v1079_v26  ;;  %1727 = vmatprep.subr.bf16.mxu0 %v2033_v0  ;;  %v1556_v26 = vld [vmem:[%s2370_s10] ss:$0 sm:$0xff] }
 0xa90   :  { %1722 = vmatmul.mubr.msk.bf16.vlgmr.msra.gmra.mxu1 %vm301_vm5, %v1081_v33 }
 0xa91   :  { %1737 = vmatprep.mubr.msk.bf16.mxu1 %vm2034_vm0, %v2033_v0  ;;  %1728 = vmatpush3.bf16.msra.mxu0 %v1802_v28 }
 0xa92   :  { %1741 = vmatprep.subr.bf16.mxu0 %v2033_v0  ;;  %1734 = vmatpush3.bf16.msra.mxu1 %v1803_v16 }
 0xa93   :  { %1735 = vmatprep.subr.bf16.mxu1 %v2033_v0 }
 0xa96   :  { %1736 = vmatpush3.bf16.msra.mxu1 %v1804_v13 }
 0xa97   :  { %1749 = vmatprep.subr.bf16.mxu1 %v2033_v0 }
 0xb4c   :  { %v1124_v30 = vpop.f32.mrf.mxu0 }
 0xb4e   :  { %v1717_v31 = vpop.f32.mrf.mxu0 }
 0xb50   :  { %v1127_v32 = vpop.f32.mrf.mxu0  ;;  %v1172_v34 = vpop.f32.mrf.mxu1 }
 0xb51   :  { %v1792_v35 = vpack.i.bf16 %v1172_v34, %v1124_v30 }
 0xb52   :  { %v1718_v36 = vpop.f32.mrf.mxu0  ;;  %v1723_v37 = vpop.f32.mrf.mxu1 }
 0xb53   :  { %1793 = vrot.lane.b32.xlu0 %v1792_v35, %s2047_s25 }
 0xb54   :  { %v1175_v38 = vpop.f32.mrf.mxu1 }
 0xb56   :  { %v1724_v39 = vpop.f32.mrf.mxu1 }
 0xbc5   :  { %v1794_v46 = vpop.permute.xlu0 %1793 }
 0xbc6   :  { %v1796_v49 = vunpack.i.h.bf16 %v1794_v46  ;;  %v1795_v50 = vunpack.i.l.bf16 %v1794_v46  ;;  %v1562_v46 = vld [vmem:[%s2372_s12] ss:$0 sm:$0xff] }
 0xbc8   :  { %v1208_v53 = vsel %vm1206_vm7, %v1205_v51, %v1796_v49  ;;  %v1207_v54 = vsel %vm1206_vm7, %v1204_v52, %v1795_v50 }
 0xbc9   :  { %v1209_v55 = vpack.c.bf16 %v1208_v53, %v1207_v54 }
 0xbcb   :  { %1730 = vmatmul.mubr.msk.bf16.vlgmr.msra.gmra.mxu0 %vm251_vm4, %v1209_v55 }
 0xbcc   :  { %1745 = vmatprep.mubr.msk.bf16.mxu0 %vm2034_vm0, %v2033_v0  ;;  %1742 = vmatpush3.bf16.msra.mxu0 %v1805_v4 }
 0xbcd   :  { %1743 = vmatprep.subr.bf16.mxu0 %v2033_v0 }
 0xbd0   :  { %1744 = vmatpush3.bf16.msra.mxu0 %v1806_v5 }
 0xc8b   :  { %v1270_v56 = vpop.f32.mrf.mxu0 }
 0xc8c   :  { %v1271_v60 = vadd.f32 %v1546_v57, %v1270_v56 }
 0xc8d   :  { %v1731_v58 = vpop.f32.mrf.mxu0 }
 0xc8f   :  { %v1273_v59 = vpop.f32.mrf.mxu0 }
 0xc90   :  { %v1274_v62 = vadd.f32 %v1546_v57, %v1273_v59 }
 0xc91   :  { %v1732_v63 = vpop.f32.mrf.mxu0 }
 0xc92   :  { %v1277_v3 = vpack.c.bf16 %v1274_v62, %v1271_v60 }
 0xc94   :  { %1738 = vmatmul.mubr.msk.bf16.vlgmr.msra.gmra.mxu1 %vm251_vm4, %v1277_v3 }
 0xc95   :  { %1753 = vmatprep.mubr.msk.bf16.mxu1 %vm2034_vm0, %v2033_v0  ;;  %1750 = vmatpush3.bf16.msra.mxu1 %v1807_v24 }
 0xc96   :  { %1751 = vmatprep.subr.bf16.mxu1 %v2033_v0 }
 0xc99   :  { %1752 = vmatpush3.bf16.msra.mxu1 %v1808_v25 }
 0xd54   :  { %v1338_v7 = vpop.f32.mrf.mxu1 }
 0xd55   :  { %v1339_v8 = vadd.f32 %v1550_v6, %v1338_v7 }
 0xd56   :  { %v1739_v9 = vpop.f32.mrf.mxu1 }
 0xd57   :  { %v1347_v10 = vmin.f32 %v1339_v8, 0.0  ;;  %vm1345_vm8 = vcmp.gt.f32.partialorder %v1339_v8, 0.0 }
 0xd58   :  { %v1341_v11 = vpop.f32.mrf.mxu1 }
 0xd59   :  { %v1349_v12 = vmul.f32 1.442695, %v1347_v10  ;;  %v1342_v14 = vadd.f32 %v1550_v6, %v1341_v11 }
 0xd5a   :  { %v1740_v15 = vpop.f32.mrf.mxu1 }
 0xd5b   :  { %1845 = vpow2.f32 %v1349_v12  ;;  %v1348_v17 = vmin.f32 %v1342_v14, 0.0  ;;  %vm1346_vm9 = vcmp.gt.f32.partialorder %v1342_v14, 0.0 }
 0xd5d   :  { %v1351_v29 = vmul.f32 1.442695, %v1348_v17 }
 0xd5f   :  { %1847 = vpow2.f32 %v1351_v29 }
 0xd68   :  { %v1846_v61 = vpop.eup %1845 }
 0xd69   :  { %v1554_v1 = vadd.f32 -1.0, %v1846_v61 }
 0xd6b   :  { %v1355_v18 = vmul.f32 1.6732632, %v1554_v1 }
 0xd6c   :  { %v1848_v2 = vpop.eup %1847 }
 0xd6d   :  { %v1555_v19 = vadd.f32 -1.0, %v1848_v2  ;;  %v1357_v21 = vsel %vm1345_vm8, %v1339_v8, %v1355_v18 }
 0xd6f   :  { %v1356_v20 = vmul.f32 1.6732632, %v1555_v19 }
 0xd71   :  { %v1358_v22 = vsel %vm1346_vm9, %v1342_v14, %v1356_v20 }
 0xd72   :  { %v1359_v23 = vpack.c.bf16 %v1358_v22, %v1357_v21 }
 0xd74   :  { %1746 = vmatmul.mubr.msk.bf16.vlgmr.msra.gmra.mxu0 %vm251_vm4, %v1359_v23 }
 0xe34   :  { %v1420_v33 = vpop.f32.mrf.mxu0 }
 0xe35   :  { %v1421_v27 = vadd.f32 %v1556_v26, %v1420_v33 }
 0xe36   :  { %v1747_v28 = vpop.f32.mrf.mxu0 }
 0xe37   :  { %v1429_v30 = vmin.f32 %v1421_v27, 0.0  ;;  %vm1427_vm10 = vcmp.gt.f32.partialorder %v1421_v27, 0.0 }
 0xe38   :  { %v1423_v31 = vpop.f32.mrf.mxu0 }
 0xe39   :  { %v1431_v32 = vmul.f32 1.442695, %v1429_v30  ;;  %v1424_v34 = vadd.f32 %v1556_v26, %v1423_v31 }
 0xe3a   :  { %v1748_v35 = vpop.f32.mrf.mxu0 }
 0xe3b   :  { %1849 = vpow2.f32 %v1431_v32  ;;  %v1430_v36 = vmin.f32 %v1424_v34, 0.0  ;;  %vm1428_vm11 = vcmp.gt.f32.partialorder %v1424_v34, 0.0 }
 0xe3d   :  { %v1433_v0 = vmul.f32 1.442695, %v1430_v36 }
 0xe3f   :  { %1851 = vpow2.f32 %v1433_v0 }
 0xe48   :  { %v1850_v37 = vpop.eup %1849 }
 0xe49   :  { %v1560_v38 = vadd.f32 -1.0, %v1850_v37 }
 0xe4b   :  { %v1437_v40 = vmul.f32 1.6732632, %v1560_v38 }
 0xe4c   :  { %v1852_v39 = vpop.eup %1851 }
 0xe4d   :  { %v1561_v41 = vadd.f32 -1.0, %v1852_v39  ;;  %v1439_v43 = vsel %vm1427_vm10, %v1421_v27, %v1437_v40 }
 0xe4f   :  { %v1438_v42 = vmul.f32 1.6732632, %v1561_v41 }
 0xe51   :  { %v1440_v44 = vsel %vm1428_vm11, %v1424_v34, %v1438_v42 }
 0xe52   :  { %v1441_v45 = vpack.c.bf16 %v1440_v44, %v1439_v43 }
 0xe54   :  { %1754 = vmatmul.mubr.msk.bf16.vlgmr.msra.gmra.mxu1 %vm251_vm4, %v1441_v45 }
 0xf14   :  { %v1502_v47 = vpop.f32.mrf.mxu1 }
 0xf15   :  { %v1503_v48 = vadd.f32 %v1562_v46, %v1502_v47 }
 0xf16   :  { %v1755_v49 = vpop.f32.mrf.mxu1 }
 0xf17   :  { %1509 = vst.msk [vmem:[%s2373_s13] sm:$0xff] %vm301_vm5, %v1503_v48 }
 0xf18   :  { %v1505_v50 = vpop.f32.mrf.mxu1 }
 0xf19   :  { %v1506_v51 = vadd.f32 %v1562_v46, %v1505_v50 }
 0xf1a   :  { %v1756_v52 = vpop.f32.mrf.mxu1 }
 0xf1b   :  { %1510 = vst.msk [vmem:[%s2373_s13 + $0x8] sm:$0xff] %vm301_vm5, %v1506_v51 }
 0xf1c   :  { %1515 = vsyncpa [#allocation3], 1 }
 0xf1d   :  { %1516 = vsyncpa [#allocation5], 1 }
 0xf1e   :  { %1517 = vsyncpa [#allocation8], 1 }
 0xf1f   :  { %1518 = vsyncpa [#allocation11], 1 }
 0xf20   :  { %1519 = vsyncpa [#allocation14], 1 }

</bundles_post_ra>
